<compile_context>
chip_gen: v5e
topology: v5e:2x2
jax: 0.10.0
libtpu: 0.0.40
codegen_flags: <defaults>
</compile_context>

<pallas_src>
import functools

import jax
import jax.numpy as jnp
import numpy as np
from jax import lax
from jax.experimental import pallas as pl
from jax.experimental.pallas import tpu as pltpu

ALPHAS = (0.5, 1.0, 2.0)  # canonical JAN Gaussian-kernel alphas (same for every layer)


def _round_up(x: int, m: int) -> int:
    return ((x + m - 1) // m) * m


def _sum_of_gaussians(d2, mean_d2, alphas):
    """sum_a exp(-d2 / (2 * a * mean_d2)).

    For the canonical alpha set {0.5, 1, 2} use a SINGLE EUP exponential:
      t = K(alpha=2) = exp(-d2 / (4*mean)),  K(1) = t^2,  K(0.5) = t^4  (VPU muls).
    """
    if tuple(sorted(alphas)) == (0.5, 1.0, 2.0):
        t = jnp.exp(d2 * (-0.25 / mean_d2))   # alpha = 2.0
        t2 = t * t                            # alpha = 1.0
        return t + t2 + t2 * t2               # + alpha = 0.5
    # Generic fallback: one exp per alpha, accumulator seeded from the first term.
    e = d2 * (-0.5 / mean_d2)
    feats = jnp.exp(e * (1.0 / float(alphas[0])))
    for a in alphas[1:]:
        feats = feats + jnp.exp(e * (1.0 / float(a)))
    return feats


def _quadratic_index_matrix(batch_size: int):
    """(2B, 2B) index matrix for linear=False, built in-kernel from iotas."""
    b = batch_size
    two_b = 2 * b
    row = lax.broadcasted_iota(jnp.int32, (two_b, two_b), 0)
    col = lax.broadcasted_iota(jnp.int32, (two_b, two_b), 1)
    row_s = row < b                      # row indexes a source sample
    col_s = col < b                      # col indexes a source sample
    same = ~(row_s ^ col_s)              # same-domain (SS or TT) block
    r = jnp.where(row_s, row, row - b)   # index within its own domain
    c = jnp.where(col_s, col, col - b)
    off = jnp.float32(1.0 / (b * (b - 1)))
    cross = jnp.float32(-1.0 / (b * b))
    return jnp.where(same, jnp.where(r == c, jnp.float32(0.0), off), cross)


def _jmmd_linear_kernel(f_ref, out_ref, km_ref, *, alphas, batch_size):
    """One grid step = one layer.  Linear JMMD estimator: only the 4B pairwise
    kernel values with nonzero index-matrix coefficients are computed (O(B*D))."""
    b = batch_size
    layer = pl.program_id(0)

    @pl.when(layer == 0)
    def _init():
        km_ref[...] = jnp.full_like(km_ref, 1.0)

    x = f_ref[0].astype(jnp.float32)                      # (2B, Dpad)
    # d2 is translation invariant: mean-center so the analytic mean(d2) below is
    # numerically stable and ||sum_i x_i||^2 drops out exactly.
    xc = x - jnp.mean(x, axis=0, keepdims=True)
    # mean over the full (2B)^2 pairwise-d2 matrix (incl. zero diagonal):
    #   sum_ij d2_ij = 2 * N * sum_i ||xc_i||^2  (centered)  ->  / N^2, N = 2B
    mean_d2 = jnp.sum(xc * xc) * (1.0 / float(b))

    xs, xt = xc[:b], xc[b:]                               # (B, Dpad) halves
    # xs_n[i] = xs[(i+1) % B]  -- XLU sublane rotation with a static shift.
    xs_n = pltpu.roll(xs, b - 1, 0)
    xt_n = pltpu.roll(xt, b - 1, 0)

    def pair_feats(u, v):
        d = u - v
        d2 = jnp.sum(d * d, axis=-1, keepdims=True)       # (B, 1) row-wise distance
        return _sum_of_gaussians(d2, mean_d2, alphas)

    # Accumulate the product over layers only for the needed pairs.
    km_ref[0] = km_ref[0] * pair_feats(xs, xs_n)          # (s1, s2)  coeff +1/B
    km_ref[1] = km_ref[1] * pair_feats(xt, xt_n)          # (t1, t2)  coeff +1/B
    km_ref[2] = km_ref[2] * pair_feats(xs, xt_n)          # (s1, t2)  coeff -1/B
    km_ref[3] = km_ref[3] * pair_feats(xs_n, xt)          # (s2, t1)  coeff -1/B

    @pl.when(layer == pl.num_programs(0) - 1)
    def _finalize():
        km = km_ref[...]
        signed = (jnp.sum(km[0]) + jnp.sum(km[1])
                  - jnp.sum(km[2]) - jnp.sum(km[3]))
        out_ref[0, 0] = signed * (1.0 / float(b)) + 2.0 / float(b - 1)


def _jmmd_dense_kernel(f_ref, out_ref, km_ref, *, alphas, batch_size, gram_dtype):
    """One grid step = one layer.  Dense path (linear=False needs every entry of the
    (2B,2B) kernel matrix): MXU gram, analytic mean(d2), single-exp Gaussian triple."""
    two_b = 2 * batch_size
    layer = pl.program_id(0)

    @pl.when(layer == 0)
    def _init():
        km_ref[...] = jnp.full_like(km_ref, 1.0)

    x = f_ref[0].astype(jnp.float32)                      # (2B, Dpad)
    xc = x - jnp.mean(x, axis=0, keepdims=True)           # stabilizes mean(d2)
    # Gram: contract the feature (last) dim of xc with itself -- no transposed copy.
    # gram_dtype=bf16 feeds the fast MXU path on v6e/v7x (default: input dtype).
    op = xc if jnp.dtype(gram_dtype) == jnp.dtype(jnp.float32) else xc.astype(gram_dtype)
    gram = lax.dot_general(op, op, dimension_numbers=(((1,), (1,)), ((), ())),
                           preferred_element_type=jnp.float32)       # (2B, 2B)
    sq = jnp.sum(xc * xc, axis=-1, keepdims=True)         # (2B, 1) squared norms
    d2 = jnp.maximum(sq + sq.T - 2.0 * gram, 0.0)         # clamp fp rounding noise
    mean_d2 = jnp.sum(sq) * (2.0 / float(two_b))          # analytic mean (centered)
    km_ref[...] = km_ref[...] * _sum_of_gaussians(d2, mean_d2, alphas)

    @pl.when(layer == pl.num_programs(0) - 1)
    def _finalize():
        idx = _quadratic_index_matrix(batch_size)
        out_ref[0, 0] = jnp.sum(km_ref[...] * idx) + 2.0 / float(batch_size - 1)


def jmmd_loss(z_s, z_t, *, linear: bool = True, alphas=ALPHAS, gram_dtype=None):
    """z_s, z_t: lists of per-layer features, each (B, D_l). Returns the scalar loss."""
    assert len(z_s) == len(z_t) and len(z_s) >= 1
    batch_size = int(z_s[0].shape[0])
    assert batch_size > 1, "JMMD needs batch_size > 1 (2/(B-1) bias, index matrix)"
    num_layers = len(z_s)
    two_b = 2 * batch_size

    # One lane-aligned slab (L, 2B, Dpad): heterogeneous D_l are zero-padded to a
    # common 128-multiple so the layer index can be a single pipelined grid axis.
    # Zero columns contribute nothing to d2 / mean(d2) / the gram.  bf16 inputs stay
    # bf16 on the DMA/MXU path; only the elementwise math is upcast to f32.
    dtype = jnp.result_type(*(f.dtype for f in list(z_s) + list(z_t)))
    d_pad = _round_up(max(int(f.shape[1]) for f in z_s), 128)

    def _layer(fs, ft):
        f = jnp.concatenate([fs, ft], axis=0).astype(dtype)          # (2B, D_l)
        return jnp.pad(f, ((0, 0), (0, d_pad - int(f.shape[1]))))
    stacked = jnp.stack([_layer(fs, ft) for fs, ft in zip(z_s, z_t)], axis=0)

    alphas = tuple(float(a) for a in alphas)
    gd = jnp.dtype(gram_dtype) if gram_dtype is not None else jnp.dtype(dtype)

    if linear:
        kernel = functools.partial(_jmmd_linear_kernel, alphas=alphas,
                                   batch_size=batch_size)
        km_scratch = pltpu.VMEM((4, batch_size, 1), jnp.float32)
        live_f32 = (two_b + 6 * batch_size) * d_pad * 4               # xc + row temps
    else:
        kernel = functools.partial(_jmmd_dense_kernel, alphas=alphas,
                                   batch_size=batch_size, gram_dtype=gd)
        km_scratch = pltpu.VMEM((two_b, two_b), jnp.float32)
        live_f32 = two_b * d_pad * 4 + 8 * two_b * two_b * 4          # xc + (2B,2B) temps

    # Explicit VMEM budget: double-buffered layer block + live f32 temporaries,
    # 2x headroom, capped at 64 MiB (v7x physical; v5e/v6e scoped defaults are small).
    block_bytes = two_b * d_pad * jnp.dtype(dtype).itemsize
    needed = 2 * block_bytes + live_f32
    vmem_limit = int(min(64 * 2**20, max(8 * 2**20, 2 * needed)))

    out = pl.pallas_call(
        kernel,
        out_shape=jax.ShapeDtypeStruct((1, 1), jnp.float32),
        grid_spec=pltpu.PrefetchScalarGridSpec(
            num_scalar_prefetch=0,
            grid=(num_layers,),  # layer axis: pipelined reduction into the km scratch
            in_specs=[pl.BlockSpec((1, two_b, d_pad), lambda l: (l, 0, 0))],
            out_specs=pl.BlockSpec(memory_space=pltpu.MemorySpace.SMEM),
            scratch_shapes=[km_scratch],
        ),
        compiler_params=pltpu.CompilerParams(
            dimension_semantics=("arbitrary",),
            vmem_limit_bytes=vmem_limit,
        ),
    )(stacked)
    return out[0, 0]


# ----------------------- pure-JAX reference (for checking) -----------------------
def _index_matrix_np(batch_size: int, linear: bool = True) -> np.ndarray:
    m = np.zeros((2 * batch_size, 2 * batch_size), dtype=np.float32)
    if linear:
        for i in range(batch_size):
            s1, s2 = i, (i + 1) % batch_size
            t1, t2 = s1 + batch_size, s2 + batch_size
            m[s1, s2] = 1.0 / batch_size
            m[t1, t2] = 1.0 / batch_size
            m[s1, t2] = -1.0 / batch_size
            m[s2, t1] = -1.0 / batch_size
    else:
        x = 1.0 / (batch_size * (batch_size - 1)) * (1.0 - np.eye(batch_size, dtype=np.float32))
        y = -1.0 / (batch_size * batch_size) * np.ones((batch_size, batch_size), dtype=np.float32)
        m = np.block([[x, y], [y, x]]).astype(np.float32)
    return m


def _reference(z_s, z_t, *, linear=True, alphas=ALPHAS):
    batch_size = int(z_s[0].shape[0])
    idx = jnp.asarray(_index_matrix_np(batch_size, linear))
    km = jnp.ones_like(idx)
    for fs, ft in zip(z_s, z_t):
        x = jnp.concatenate([fs, ft], axis=0).astype(jnp.float32)
        d2 = jnp.sum((x[None, :, :] - x[:, None, :]) ** 2, axis=-1)
        mean_d2 = jnp.mean(d2)
        feats = sum(jnp.exp(-d2 / (2.0 * a * mean_d2)) for a in alphas)
        km = km * feats
    return jnp.sum(km * idx) + 2.0 / float(batch_size - 1)


if __name__ == "__main__":
    key = jax.random.PRNGKey(0)
    B = 8               # batch size per domain (multiple of 8 keeps sublane tiles aligned)
    dims = (64, 32)     # heterogeneous per-layer feature dims (e.g. bottleneck + logits)

    ks = jax.random.split(key, 2 * len(dims))
    z_s = [jax.random.normal(ks[2 * i], (B, d), dtype=jnp.float32) for i, d in enumerate(dims)]
    z_t = [jax.random.normal(ks[2 * i + 1], (B, d), dtype=jnp.float32) + 0.5
           for i, d in enumerate(dims)]

    # linear index-matrix path (module default) -> sparse O(B*D) kernel
    loss = jax.block_until_ready(jmmd_loss(z_s, z_t, linear=True))
    ref = jax.block_until_ready(_reference(z_s, z_t, linear=True))
    assert jnp.allclose(loss, ref, rtol=1e-4, atol=1e-4), (loss, ref)

    # quadratic (linear=False) index-matrix path -> dense MXU-gram kernel
    loss_q = jax.block_until_ready(jmmd_loss(z_s, z_t, linear=False))
    ref_q = jax.block_until_ready(_reference(z_s, z_t, linear=False))
    assert jnp.allclose(loss_q, ref_q, rtol=1e-4, atol=1e-4), (loss_q, ref_q)

    print("KERNEL_OK")
</pallas_src>

<mosaic_0001>
module attributes {stable_mosaic.version = 11 : i64} {
  func.func @_jmmd_linear_kernel(%arg0: i32, %arg1: memref<1x16x128xf32, #tpu.memory_space<vmem>>, %arg2: memref<1x1xf32, #tpu.memory_space<smem>>, %arg3: memref<4x8x1xf32, #tpu.memory_space<vmem>>) attributes {dimension_semantics = [#tpu.dimension_semantics<arbitrary>], iteration_bounds = array<i64: 2>, scalar_prefetch = 0 : i64, scratch_operands = 1 : i64, tpu.core_type = #tpu.core_type<tc>, window_params = [{transform_indices = @transform_0, window_bounds = array<i64: 1, 16, 128>}, {transform_indices = @transform_1, window_bounds = array<i64: 1, 1>}]} {
    %c0_i32 = arith.constant 0 : i32
    %0 = arith.cmpi eq, %arg0, %c0_i32 : i32
    %1 = arith.extui %0 : i1 to i32
    %c0_i32_0 = arith.constant 0 : i32
    %2 = arith.cmpi ne, %1, %c0_i32_0 : i32
    scf.if %2 {
      %cst_37 = arith.constant 1.000000e+00 : f32
      %96 = vector.broadcast %cst_37 : f32 to vector<4x8x1xf32>
      %c0_38 = arith.constant 0 : index
      %c0_39 = arith.constant 0 : index
      %c0_40 = arith.constant 0 : index
      %97 = vector.load %arg3[%c0_38, %c0_39, %c0_40] : memref<4x8x1xf32, #tpu.memory_space<vmem>>, vector<4x8x1xf32>
      tpu.vector_store %arg3[%c0_38, %c0_39, %c0_40], %96 {strides = array<i32>} : memref<4x8x1xf32, #tpu.memory_space<vmem>>, vector<4x8x1xf32>,
    } else {
    }
    %c0 = arith.constant 0 : index
    %c0_1 = arith.constant 0 : index
    %c0_2 = arith.constant 0 : index
    %3 = vector.load %arg1[%c0, %c0_1, %c0_2] : memref<1x16x128xf32, #tpu.memory_space<vmem>>, vector<1x16x128xf32>
    %4 = vector.shape_cast %3 : vector<1x16x128xf32> to vector<16x128xf32>
    %cst = arith.constant dense<0.000000e+00> : vector<128xf32>
    %5 = vector.multi_reduction <add>, %4, %cst [0] : vector<16x128xf32> to vector<128xf32>
    %6 = vector.shape_cast %5 : vector<128xf32> to vector<1x128xf32>
    %cst_3 = arith.constant 1.600000e+01 : f32
    %7 = vector.broadcast %cst_3 : f32 to vector<1x128xf32>
    %8 = arith.divf %6, %7 : vector<1x128xf32>
    %9 = vector.broadcast %8 : vector<1x128xf32> to vector<16x128xf32>
    %10 = arith.subf %4, %9 : vector<16x128xf32>
    %11 = arith.mulf %10, %10 : vector<16x128xf32>
    %12 = vector.shape_cast %11 : vector<16x128xf32> to vector<1x16x128xf32>
    %cst_4 = arith.constant dense<0.000000e+00> : vector<1xf32>
    %13 = vector.multi_reduction <add>, %12, %cst_4 [1, 2] : vector<1x16x128xf32> to vector<1xf32>
    %14 = vector.shape_cast %13 : vector<1xf32> to vector<1x1x1xf32>
    %15 = vector.extract %14[0, 0, 0] : f32 from vector<1x1x1xf32>
    %cst_5 = arith.constant 1.250000e-01 : f32
    %16 = arith.mulf %15, %cst_5 : f32
    %17 = vector.extract_strided_slice %10 {offsets = [0, 0], sizes = [8, 128], strides = [1, 1]} : vector<16x128xf32> to vector<8x128xf32>
    %18 = vector.extract_strided_slice %10 {offsets = [8, 0], sizes = [8, 128], strides = [1, 1]} : vector<16x128xf32> to vector<8x128xf32>
    %c7_i32 = arith.constant 7 : i32
    %19 = tpu.dynamic_rotate %17 by %c7_i32 dim 0 : vector<8x128xf32>, i32 -> vector<8x128xf32>
    %c7_i32_6 = arith.constant 7 : i32
    %20 = tpu.dynamic_rotate %18 by %c7_i32_6 dim 0 : vector<8x128xf32>, i32 -> vector<8x128xf32>
    %c0_7 = arith.constant 0 : index
    %c0_8 = arith.constant 0 : index
    %c0_9 = arith.constant 0 : index
    %21 = vector.load %arg3[%c0_7, %c0_8, %c0_9] : memref<4x8x1xf32, #tpu.memory_space<vmem>>, vector<1x8x1xf32>
    %22 = vector.shape_cast %21 : vector<1x8x1xf32> to vector<8x1xf32>
    %23 = arith.subf %17, %19 : vector<8x128xf32>
    %24 = arith.mulf %23, %23 : vector<8x128xf32>
    %cst_10 = arith.constant dense<0.000000e+00> : vector<8xf32>
    %25 = vector.multi_reduction <add>, %24, %cst_10 [1] : vector<8x128xf32> to vector<8xf32>
    %26 = vector.shape_cast %25 : vector<8xf32> to vector<8x1xf32>
    %cst_11 = arith.constant -2.500000e-01 : f32
    %27 = arith.divf %cst_11, %16 : f32
    %28 = vector.broadcast %27 : f32 to vector<8x1xf32>
    %29 = arith.mulf %26, %28 : vector<8x1xf32>
    %30 = math.exp %29 : vector<8x1xf32>
    %31 = arith.mulf %30, %30 : vector<8x1xf32>
    %32 = arith.addf %30, %31 : vector<8x1xf32>
    %33 = arith.mulf %31, %31 : vector<8x1xf32>
    %34 = arith.addf %32, %33 : vector<8x1xf32>
    %35 = arith.mulf %22, %34 : vector<8x1xf32>
    %c0_12 = arith.constant 0 : index
    %c0_13 = arith.constant 0 : index
    %c0_14 = arith.constant 0 : index
    %36 = vector.load %arg3[%c0_12, %c0_13, %c0_14] : memref<4x8x1xf32, #tpu.memory_space<vmem>>, vector<1x8x1xf32>
    %37 = vector.shape_cast %36 : vector<1x8x1xf32> to vector<8x1xf32>
    %38 = vector.shape_cast %35 : vector<8x1xf32> to vector<1x8x1xf32>
    tpu.vector_store %arg3[%c0_12, %c0_13, %c0_14], %38 {strides = array<i32>} : memref<4x8x1xf32, #tpu.memory_space<vmem>>, vector<1x8x1xf32>,
    %c1 = arith.constant 1 : index
    %c0_15 = arith.constant 0 : index
    %c0_16 = arith.constant 0 : index
    %39 = vector.load %arg3[%c1, %c0_15, %c0_16] : memref<4x8x1xf32, #tpu.memory_space<vmem>>, vector<1x8x1xf32>
    %40 = vector.shape_cast %39 : vector<1x8x1xf32> to vector<8x1xf32>
    %41 = arith.subf %18, %20 : vector<8x128xf32>
    %42 = arith.mulf %41, %41 : vector<8x128xf32>
    %cst_17 = arith.constant dense<0.000000e+00> : vector<8xf32>
    %43 = vector.multi_reduction <add>, %42, %cst_17 [1] : vector<8x128xf32> to vector<8xf32>
    %44 = vector.shape_cast %43 : vector<8xf32> to vector<8x1xf32>
    %cst_18 = arith.constant -2.500000e-01 : f32
    %45 = arith.divf %cst_18, %16 : f32
    %46 = vector.broadcast %45 : f32 to vector<8x1xf32>
    %47 = arith.mulf %44, %46 : vector<8x1xf32>
    %48 = math.exp %47 : vector<8x1xf32>
    %49 = arith.mulf %48, %48 : vector<8x1xf32>
    %50 = arith.addf %48, %49 : vector<8x1xf32>
    %51 = arith.mulf %49, %49 : vector<8x1xf32>
    %52 = arith.addf %50, %51 : vector<8x1xf32>
    %53 = arith.mulf %40, %52 : vector<8x1xf32>
    %c1_19 = arith.constant 1 : index
    %c0_20 = arith.constant 0 : index
    %c0_21 = arith.constant 0 : index
    %54 = vector.load %arg3[%c1_19, %c0_20, %c0_21] : memref<4x8x1xf32, #tpu.memory_space<vmem>>, vector<1x8x1xf32>
    %55 = vector.shape_cast %54 : vector<1x8x1xf32> to vector<8x1xf32>
    %56 = vector.shape_cast %53 : vector<8x1xf32> to vector<1x8x1xf32>
    tpu.vector_store %arg3[%c1_19, %c0_20, %c0_21], %56 {strides = array<i32>} : memref<4x8x1xf32, #tpu.memory_space<vmem>>, vector<1x8x1xf32>,
    %c2 = arith.constant 2 : index
    %c0_22 = arith.constant 0 : index
    %c0_23 = arith.constant 0 : index
    %57 = vector.load %arg3[%c2, %c0_22, %c0_23] : memref<4x8x1xf32, #tpu.memory_space<vmem>>, vector<1x8x1xf32>
    %58 = vector.shape_cast %57 : vector<1x8x1xf32> to vector<8x1xf32>
    %59 = arith.subf %17, %20 : vector<8x128xf32>
    %60 = arith.mulf %59, %59 : vector<8x128xf32>
    %cst_24 = arith.constant dense<0.000000e+00> : vector<8xf32>
    %61 = vector.multi_reduction <add>, %60, %cst_24 [1] : vector<8x128xf32> to vector<8xf32>
    %62 = vector.shape_cast %61 : vector<8xf32> to vector<8x1xf32>
    %cst_25 = arith.constant -2.500000e-01 : f32
    %63 = arith.divf %cst_25, %16 : f32
    %64 = vector.broadcast %63 : f32 to vector<8x1xf32>
    %65 = arith.mulf %62, %64 : vector<8x1xf32>
    %66 = math.exp %65 : vector<8x1xf32>
    %67 = arith.mulf %66, %66 : vector<8x1xf32>
    %68 = arith.addf %66, %67 : vector<8x1xf32>
    %69 = arith.mulf %67, %67 : vector<8x1xf32>
    %70 = arith.addf %68, %69 : vector<8x1xf32>
    %71 = arith.mulf %58, %70 : vector<8x1xf32>
    %c2_26 = arith.constant 2 : index
    %c0_27 = arith.constant 0 : index
    %c0_28 = arith.constant 0 : index
    %72 = vector.load %arg3[%c2_26, %c0_27, %c0_28] : memref<4x8x1xf32, #tpu.memory_space<vmem>>, vector<1x8x1xf32>
    %73 = vector.shape_cast %72 : vector<1x8x1xf32> to vector<8x1xf32>
    %74 = vector.shape_cast %71 : vector<8x1xf32> to vector<1x8x1xf32>
    tpu.vector_store %arg3[%c2_26, %c0_27, %c0_28], %74 {strides = array<i32>} : memref<4x8x1xf32, #tpu.memory_space<vmem>>, vector<1x8x1xf32>,
    %c3 = arith.constant 3 : index
    %c0_29 = arith.constant 0 : index
    %c0_30 = arith.constant 0 : index
    %75 = vector.load %arg3[%c3, %c0_29, %c0_30] : memref<4x8x1xf32, #tpu.memory_space<vmem>>, vector<1x8x1xf32>
    %76 = vector.shape_cast %75 : vector<1x8x1xf32> to vector<8x1xf32>
    %77 = arith.subf %19, %18 : vector<8x128xf32>
    %78 = arith.mulf %77, %77 : vector<8x128xf32>
    %cst_31 = arith.constant dense<0.000000e+00> : vector<8xf32>
    %79 = vector.multi_reduction <add>, %78, %cst_31 [1] : vector<8x128xf32> to vector<8xf32>
    %80 = vector.shape_cast %79 : vector<8xf32> to vector<8x1xf32>
    %cst_32 = arith.constant -2.500000e-01 : f32
    %81 = arith.divf %cst_32, %16 : f32
    %82 = vector.broadcast %81 : f32 to vector<8x1xf32>
    %83 = arith.mulf %80, %82 : vector<8x1xf32>
    %84 = math.exp %83 : vector<8x1xf32>
    %85 = arith.mulf %84, %84 : vector<8x1xf32>
    %86 = arith.addf %84, %85 : vector<8x1xf32>
    %87 = arith.mulf %85, %85 : vector<8x1xf32>
    %88 = arith.addf %86, %87 : vector<8x1xf32>
    %89 = arith.mulf %76, %88 : vector<8x1xf32>
    %c3_33 = arith.constant 3 : index
    %c0_34 = arith.constant 0 : index
    %c0_35 = arith.constant 0 : index
    %90 = vector.load %arg3[%c3_33, %c0_34, %c0_35] : memref<4x8x1xf32, #tpu.memory_space<vmem>>, vector<1x8x1xf32>
    %91 = vector.shape_cast %90 : vector<1x8x1xf32> to vector<8x1xf32>
    %92 = vector.shape_cast %89 : vector<8x1xf32> to vector<1x8x1xf32>
    tpu.vector_store %arg3[%c3_33, %c0_34, %c0_35], %92 {strides = array<i32>} : memref<4x8x1xf32, #tpu.memory_space<vmem>>, vector<1x8x1xf32>,
    %c1_i32 = arith.constant 1 : i32
    %93 = arith.cmpi eq, %arg0, %c1_i32 : i32
    %94 = arith.extui %93 : i1 to i32
    %c0_i32_36 = arith.constant 0 : i32
    %95 = arith.cmpi ne, %94, %c0_i32_36 : i32
    scf.if %95 {
      %c0_37 = arith.constant 0 : index
      %c0_38 = arith.constant 0 : index
      %c0_39 = arith.constant 0 : index
      %96 = vector.load %arg3[%c0_37, %c0_38, %c0_39] : memref<4x8x1xf32, #tpu.memory_space<vmem>>, vector<4x8x1xf32>
      %97 = vector.extract_strided_slice %96 {offsets = [0, 0, 0], sizes = [1, 8, 1], strides = [1, 1, 1]} : vector<4x8x1xf32> to vector<1x8x1xf32>
      %98 = vector.shape_cast %97 : vector<1x8x1xf32> to vector<8x1xf32>
      %99 = vector.shape_cast %98 : vector<8x1xf32> to vector<1x8x1xf32>
      %cst_40 = arith.constant dense<0.000000e+00> : vector<1xf32>
      %100 = vector.multi_reduction <add>, %99, %cst_40 [1, 2] : vector<1x8x1xf32> to vector<1xf32>
      %101 = vector.shape_cast %100 : vector<1xf32> to vector<1x1x1xf32>
      %102 = vector.extract %101[0, 0, 0] : f32 from vector<1x1x1xf32>
      %103 = vector.extract_strided_slice %96 {offsets = [1, 0, 0], sizes = [1, 8, 1], strides = [1, 1, 1]} : vector<4x8x1xf32> to vector<1x8x1xf32>
      %104 = vector.shape_cast %103 : vector<1x8x1xf32> to vector<8x1xf32>
      %105 = vector.shape_cast %104 : vector<8x1xf32> to vector<1x8x1xf32>
      %cst_41 = arith.constant dense<0.000000e+00> : vector<1xf32>
      %106 = vector.multi_reduction <add>, %105, %cst_41 [1, 2] : vector<1x8x1xf32> to vector<1xf32>
      %107 = vector.shape_cast %106 : vector<1xf32> to vector<1x1x1xf32>
      %108 = vector.extract %107[0, 0, 0] : f32 from vector<1x1x1xf32>
      %109 = arith.addf %102, %108 : f32
      %110 = vector.extract_strided_slice %96 {offsets = [2, 0, 0], sizes = [1, 8, 1], strides = [1, 1, 1]} : vector<4x8x1xf32> to vector<1x8x1xf32>
      %111 = vector.shape_cast %110 : vector<1x8x1xf32> to vector<8x1xf32>
      %112 = vector.shape_cast %111 : vector<8x1xf32> to vector<1x8x1xf32>
      %cst_42 = arith.constant dense<0.000000e+00> : vector<1xf32>
      %113 = vector.multi_reduction <add>, %112, %cst_42 [1, 2] : vector<1x8x1xf32> to vector<1xf32>
      %114 = vector.shape_cast %113 : vector<1xf32> to vector<1x1x1xf32>
      %115 = vector.extract %114[0, 0, 0] : f32 from vector<1x1x1xf32>
      %116 = arith.subf %109, %115 : f32
      %117 = vector.extract_strided_slice %96 {offsets = [3, 0, 0], sizes = [1, 8, 1], strides = [1, 1, 1]} : vector<4x8x1xf32> to vector<1x8x1xf32>
      %118 = vector.shape_cast %117 : vector<1x8x1xf32> to vector<8x1xf32>
      %119 = vector.shape_cast %118 : vector<8x1xf32> to vector<1x8x1xf32>
      %cst_43 = arith.constant dense<0.000000e+00> : vector<1xf32>
      %120 = vector.multi_reduction <add>, %119, %cst_43 [1, 2] : vector<1x8x1xf32> to vector<1xf32>
      %121 = vector.shape_cast %120 : vector<1xf32> to vector<1x1x1xf32>
      %122 = vector.extract %121[0, 0, 0] : f32 from vector<1x1x1xf32>
      %123 = arith.subf %116, %122 : f32
      %cst_44 = arith.constant 1.250000e-01 : f32
      %124 = arith.mulf %123, %cst_44 : f32
      %cst_45 = arith.constant 0.285714298 : f32
      %125 = arith.addf %124, %cst_45 : f32
      %c0_46 = arith.constant 0 : index
      %c0_47 = arith.constant 0 : index
      %126 = memref.load %arg2[%c0_46, %c0_47] : memref<1x1xf32, #tpu.memory_space<smem>>
      memref.store %125, %arg2[%c0_46, %c0_47] : memref<1x1xf32, #tpu.memory_space<smem>>
    } else {
    }
    return
  }
  func.func @transform_0(%arg0: i32) -> (i32, i32, i32) {
    %c0_i32 = arith.constant 0 : i32
    %c0_i32_0 = arith.constant 0 : i32
    %c0_i32_1 = arith.constant 0 : i32
    return %arg0, %c0_i32, %c0_i32_0 : i32, i32, i32
  }
  func.func @transform_1(%arg0: i32) -> (i32, i32) {
    %c0_i32 = arith.constant 0 : i32
    %c0_i32_0 = arith.constant 0 : i32
    %c0_i32_1 = arith.constant 0 : i32
    return %c0_i32, %c0_i32_0 : i32, i32
  }
}

</mosaic_0001>

<bundles_post_ra>
// kernel: tpu_custom_call.1
= control target key start
LH: loop header
LB: loop body
LE: loop exit
PB: predicated region body
PF: predicated region fallthrough
CT: control target
= control target key end

     0   :  { %6 = vsyncpa [#allocation4], 0  ;;  %s648_s0 = inlined_call_operand.hbm [shape: f32[2,16,128], index: 0, kind: input, shape index: {}]   ;;  %s649_s1 = inlined_call_operand.hbm [shape: f32[1,1], index: 1, kind: output, shape index: {}]  }
   0x1   :  { %8 = vsyncpa [#allocation4 + $0x1], 0 }
   0x2   :  { %9 = vsyncpa [#allocation5], 0  ;;  %s547_s6 = smov 0   ;;  %s549_s7 = smov 0  }
   0x3   :  { %s551_s8 = smov 0   ;;  %s553_s9 = smov 0  }
   0x4 LB: > { %s566_s10 = sadd.s32 4294967295, %s530_s9   ;;  %s569_s11 = sadd.s32 1, %s530_s9   ;;  %s530_s9 = sphi %s553_s9, %s656_s9   ;;  %s526_s8 = sphi %s551_s8, %s655_s8   ;;  %s522_s7 = sphi %s549_s7, %s654_s7   ;;  %s518_s6 = sphi %s547_s6, %s653_s6  }
   0x5   : > { %s19_s12 = ssub.s32 %s530_s9, %s569_s11  ;;  %s22_s13 = sadd.s32 1, %s526_s8 }
   0x6   : > { %p20_p0 = scmp.eq.s32.totalorder %s19_s12, 0  ;;  %p29_p1 = scmp.ne.s32.totalorder %s526_s8, %s522_s7 }
   0x7   : > { %p30_p2 = scmp.eq.s32.totalorder %s530_s9, 0  ;;  %p35_p3 = scmp.ne.s32.totalorder %s522_s7, %s518_s6 }
   0x8   : > { %s579_s14 = scalar_select %p20_p0, %s526_s8, %s22_s13  }
   0x9   : > { %p581_p4 = por %p30_p2, %p29_p1  ;;  %p36_p5 = scmp.eq.s32.totalorder %s566_s10, 0 }
   0xa   : > { %p396_p6 = scmp.lt.s32.totalorder %s530_s9, 2  ;;  %s80_s17 = sand.u32 1, %s526_s8  }
   0xb   : > { %p587_p7 = por %p36_p5, %p35_p3  ;;  %s362_s18 = sshll.u32 %s80_s17, 4 }
   0xc   : > { %s373_s19 = sshll.u32 %s530_s9, 4  ;;  %s84_s23 = scalar_lea.vmem [#allocation3], %s362_s18 }
   0xd   : > { %s89_s22 = scalar_lea.hbm %s648_s0, %s373_s19  ;;  %s92_s24 = sshll.u32 %s84_s23, 4  ;;  %s93_s24 = int_to_ptr.vmem [resolvable:$true] %s92_s24 }
   0xe   : > { %s90_s25 = sshll.u32 %s89_s22, 4  ;;  %p598_p8 = pnand %p396_p6, %p581_p4  ;;  %s91_s25 = int_to_ptr.hbm [resolvable:$true] %s90_s25 }
   0xf   : > { %p365_p9 = scmp.ge.s32.totalorder %s530_s9, 1  ;;  %s81_s27 = scalar_lea.sflag [#allocation4], %s80_s17 }
  0x10   : > { %s448_s28 = sshra.s32 %s91_s25, 4  ;;  %p452_p11 = pneg %p598_p8  ;;  %s449_s28 = int_to_ptr.hbm [resolvable:$true] %s448_s28 }
  0x11   : > { %s450_s29 = scalar_lea.hbm %s449_s28, 16  ;;  %s455_s3 = scalar_lea.hbm %s648_s0, 32 }
  0x12   : > { %p451_p10 = scmp.ne.s32.totalorder %s449_s28, %s450_s29  ;;  %p456_p0 = scmp.lt.s32.totalorder %s449_s28, %s648_s0 }
  0x13   : > { %p457_p1 = scmp.lt.s32.totalorder %s455_s3, %s450_s29 }
  0x14   : > { %p453_p12 = pnand %p452_p11, %p451_p10 }
  0x15   : > { %p458_p2 = por %p457_p1, %p456_p0 }
  0x16   : > { %p454_p13 = pneg %p453_p12 }
  0x18   : > { %p459_p3 = pnand %p458_p2, %p454_p13 }
  0x1a   : > { %462 = shalt.err (!%p459_p3)
}
  0x1b   : > { %s532_s6 = smov 128   ;;  %s533_s12 = smov 8  }
  0x1c   : > { %395 = dma.hbm_to_vmem [thread:$0]  (!%p598_p8), %s91_s25, 256, %s93_s24, %s81_s27, %s532_s6, %s532_s6, %s533_s12  }
  0x1d   : > { %p100_p4 = scmp.lt.s32.totalorder %s530_s9, 3 }
  0x1f   : > { %p101_p5 = pnand %p365_p9, %p100_p4 }
  0x20   : > { %s106_s13 = sand.u32 (!%p101_p5), 1, %s522_s7  }
  0x21   : > { %104 = sbr.rel (%p101_p5) target bundleno = 561 (0x231), region = 24  ;;  %s366_s15 = sshll.u32 (!%p101_p5), %s106_s13, 4 }
  0x22   : > { %s107_s17 = scalar_lea.sflag (!%p101_p5), [#allocation4], %s106_s13  ;;  %s110_s18 = scalar_lea.vmem (!%p101_p5), [#allocation3], %s366_s15 }
  0x26   : > { %509 = dma.done.wait (%p587_p7), %s107_s17, 256  }
  0x27   : > { %511 = vsyncadd (%p587_p7), %s107_s17, 4294967040  ;;  %p367_p6 = scmp.ne.s32.totalorder %s566_s10, 0 }
  0x29   : > { %128 = sbr.rel (%p367_p6) target bundleno = 51 (0x33), region = 32 }
  0x2e   : > { %vm129_vm0 = vcmask 7168   ;;  %v534_v0 = vmov 1.0  }
  0x2f   : > { %130 = vst.msk [vmem:[#allocation2] sm:$0xff] %vm129_vm0, %v534_v0 }
  0x30   : > { %131 = vst.msk [vmem:[#allocation2 + $0x8] sm:$0xff] %vm129_vm0, %v534_v0 }
  0x31   : > { %132 = vst.msk [vmem:[#allocation2 + $0x10] sm:$0xff] %vm129_vm0, %v534_v0 }
  0x32   : > { %133 = vst.msk [vmem:[#allocation2 + $0x18] sm:$0xff] %vm129_vm0, %v534_v0 }
  0x33 PF: > { %v134_v1 = vld [vmem:[%s110_s18] sm:$0xff]  ;;  %v135_v2 = vld [vmem:[%s110_s18 + $0x8] sm:$0xff]  ;;  %v535_v4 = vmov 16.0   ;;  %vm199_vm6 = vcmask 7168   ;;  %p368_p7 = scmp.ne.s32.totalorder %s566_s10, 1 }
  0x34   : > { %v136_v3 = vadd.f32 %v135_v2, %v134_v1  ;;  %436 = vrcp.f32 %v535_v4 }
  0x36   : > { %v137_v5 = vrot.slane %v136_v3, 4 }
  0x38   : > { %v138_v6 = vadd.f32 %v137_v5, %v136_v3 }
  0x3a   : > { %v437_v7 = vpop.eup %436  ;;  %v139_v8 = vrot.slane %v138_v6, 2 }
  0x3b   : > { %v144_v9 = vmul.f32 16.0, %v437_v7  ;;  %vm148_vm1 = vweird.f32 %v437_v7 }
  0x3c   : > { %v140_v10 = vadd.f32 %v139_v8, %v138_v6 }
  0x3d   : > { %v145_v11 = vsub.f32 1.0, %v144_v9  ;;  %v202_v9 = vld [vmem:[#allocation2 + $0x8] sm:$0xff] }
  0x3e   : > { %v141_v12 = vrot.slane %v140_v10, 1 }
  0x3f   : > { %v146_v13 = vmul.f32 %v437_v7, %v145_v11 }
  0x40   : > { %v142_v14 = vadd.f32 %v141_v12, %v140_v10 }
  0x41   : > { %v147_v15 = vadd.f32 %v437_v7, %v146_v13 }
  0x43   : > { %v149_v16 = vsel %vm148_vm1, %v437_v7, %v147_v15 }
  0x44   : > { %v150_v17 = vmul.f32 %v149_v16, %v142_v14  ;;  %v217_v14 = vld [vmem:[#allocation2 + $0x10] sm:$0xff] }
  0x46   : > { %v151_v18 = vsub.f32 %v134_v1, %v150_v17  ;;  %v152_v19 = vsub.f32 %v135_v2, %v150_v17 }
  0x48   : > { %v153_v20 = vmul.f32 %v151_v18, %v151_v18  ;;  %v154_v21 = vmul.f32 %v152_v19, %v152_v19  ;;  %v167_v23 = vrot.slane %v152_v19, 1  ;;  %v166_v27 = vrot.slane %v151_v18, 1 }
  0x4a   : > { %v155_v22 = vadd.f32 %v154_v21, %v153_v20  ;;  %v203_v24 = vsub.f32 %v152_v19, %v167_v23  ;;  %v218_v26 = vsub.f32 %v151_v18, %v167_v23  ;;  %v233_v29 = vsub.f32 %v166_v27, %v152_v19  ;;  %v168_v23 = vld [vmem:[#allocation2] sm:$0xff] }
  0x4b   : > { %v169_v30 = vsub.f32 %v151_v18, %v166_v27  ;;  %v232_v18 = vld [vmem:[#allocation2 + $0x18] sm:$0xff] }
  0x4c   : > { %156 = vadd.xlane.f32.xlu0 %v155_v22  ;;  %v204_v25 = vmul.f32 %v203_v24, %v203_v24  ;;  %v219_v28 = vmul.f32 %v218_v26, %v218_v26  ;;  %v234_v31 = vmul.f32 %v233_v29, %v233_v29 }
  0x4d   : > { %v170_v32 = vmul.f32 %v169_v30, %v169_v30 }
  0x4e   : > { %205 = vadd.xlane.f32.xlu1 %v204_v25  ;;  %235 = vadd.xlane.f32.xlu2 %v234_v31 }
  0x54   : > { %171 = vadd.xlane.f32.xlu0 %v170_v32 }
  0x56   : > { %220 = vadd.xlane.f32.xlu1 %v219_v28 }
  0xbf   : > { %v157_v33 = vpop.xlane.xlu0 %156 }
  0xc0   : > { %v158_v34 = vrot.slane %v157_v33, 4 }
  0xc1   : > { %v206_v51 = vpop.xlane.xlu1 %205  ;;  %v236_v53 = vpop.xlane.xlu2 %235 }
  0xc2   : > { %v159_v35 = vadd.f32 %v158_v34, %v157_v33 }
  0xc4   : > { %v160_v36 = vrot.slane %v159_v35, 2 }
  0xc6   : > { %v161_v37 = vadd.f32 %v160_v36, %v159_v35 }
  0xc7   : > { %v172_v54 = vpop.xlane.xlu0 %171 }
  0xc8   : > { %v162_v38 = vrot.slane %v161_v37, 1 }
  0xc9   : > { %v221_v52 = vpop.xlane.xlu1 %220 }
  0xca   : > { %v163_v39 = vadd.f32 %v162_v38, %v161_v37 }
  0xcc   : > { %374 = vpush %v163_v39 }
  0xfd   : > { %s375_s9 = spop %374 }
  0xfe   : > { %s165_s16 = smul.f32 0.125, %s375_s9 }
 0x100   : > { %v173_v40 = vstv %s165_s16 }
 0x101   : > { %438 = vrcp.f32 %v173_v40  ;;  %v185_v44 = vand.u32 2147483648, %v173_v40  ;;  %v183_v46 = vand.u32 2147483647, %v173_v40  ;;  %vm179_vm3 = vweird.f32 %v173_v40 }
 0x103   : > { %v186_v48 = vor.u32 1.1754944e-38, %v185_v44  ;;  %vm184_vm5 = vcmp.eq.f32.partialorder %v183_v46, 8.507059e+37 }
 0x107   : > { %v439_v41 = vpop.eup %438 }
 0x108   : > { %v175_v42 = vmul.f32 %v439_v41, %v173_v40  ;;  %vm180_vm2 = vweird.f32 %v439_v41 }
 0x109   : > { %vm181_vm4 = vmor %vm179_vm3, %vm180_vm2 }
 0x10a   : > { %v176_v43 = vsub.f32 1.0, %v175_v42 }
 0x10c   : > { %v177_v45 = vmul.f32 %v439_v41, %v176_v43 }
 0x10e   : > { %v178_v47 = vadd.f32 %v439_v41, %v177_v45 }
 0x110   : > { %v182_v49 = vsel %vm181_vm4, %v439_v41, %v178_v47 }
 0x111   : > { %v187_v50 = vsel %vm184_vm5, %v186_v48, %v182_v49 }
 0x112   : > { %376 = vpush %v187_v50 }
 0x143   : > { %s377_s19 = spop %376 }
 0x144   : > { %s189_s20 = smul.f32 -0.25, %s377_s19 }
 0x146   : > { %v190_v55 = vstv %s189_s20 }
 0x147   : > { %v207_v56 = vmul.f32 %v206_v51, %v190_v55  ;;  %v222_v57 = vmul.f32 %v221_v52, %v190_v55  ;;  %v237_v58 = vmul.f32 %v236_v53, %v190_v55  ;;  %v191_v59 = vmul.f32 %v190_v55, %v172_v54 }
 0x149   : > { %v208_v60 = vmul.f32 1.442695, %v207_v56  ;;  %v223_v61 = vmul.f32 1.442695, %v222_v57  ;;  %v238_v62 = vmul.f32 1.442695, %v237_v58 }
 0x14a   : > { %v192_v63 = vmul.f32 1.442695, %v191_v59 }
 0x14b   : > { %440 = vpow2.f32 %v208_v60 }
 0x14c   : > { %442 = vpow2.f32 %v223_v61 }
 0x14d   : > { %444 = vpow2.f32 %v238_v62 }
 0x14e   : > { %446 = vpow2.f32 %v192_v63 }
 0x151   : > { %v441_v0 = vpop.eup %440 }
 0x152   : > { %v443_v1 = vpop.eup %442  ;;  %v210_v2 = vmul.f32 %v441_v0, %v441_v0 }
 0x153   : > { %v445_v3 = vpop.eup %444  ;;  %v225_v4 = vmul.f32 %v443_v1, %v443_v1 }
 0x154   : > { %v447_v5 = vpop.eup %446  ;;  %v211_v6 = vadd.f32 %v441_v0, %v210_v2  ;;  %v212_v7 = vmul.f32 %v210_v2, %v210_v2  ;;  %v240_v8 = vmul.f32 %v445_v3, %v445_v3 }
 0x155   : > { %v226_v10 = vadd.f32 %v443_v1, %v225_v4  ;;  %v227_v11 = vmul.f32 %v225_v4, %v225_v4  ;;  %v194_v12 = vmul.f32 %v447_v5, %v447_v5 }
 0x156   : > { %v213_v13 = vadd.f32 %v212_v7, %v211_v6  ;;  %v241_v15 = vadd.f32 %v445_v3, %v240_v8  ;;  %v242_v16 = vmul.f32 %v240_v8, %v240_v8 }
 0x157   : > { %v228_v17 = vadd.f32 %v227_v11, %v226_v10  ;;  %v195_v19 = vadd.f32 %v447_v5, %v194_v12  ;;  %v196_v20 = vmul.f32 %v194_v12, %v194_v12 }
 0x158   : > { %v214_v21 = vmul.f32 %v213_v13, %v202_v9  ;;  %v243_v22 = vadd.f32 %v242_v16, %v241_v15 }
 0x159   : > { %v229_v24 = vmul.f32 %v228_v17, %v217_v14  ;;  %v197_v25 = vadd.f32 %v196_v20, %v195_v19  ;;  %249 = sbr.rel (%p368_p7) target bundleno = 555 (0x22b), region = 36 }
 0x15a   : > { %215 = vst.msk [vmem:[#allocation2 + $0x8] sm:$0xff] %vm199_vm6, %v214_v21  ;;  %v244_v26 = vmul.f32 %v243_v22, %v232_v18 }
 0x15b   : > { %230 = vst.msk [vmem:[#allocation2 + $0x10] sm:$0xff] %vm199_vm6, %v229_v24  ;;  %v198_v27 = vmul.f32 %v197_v25, %v168_v23 }
 0x15c   : > { %245 = vst.msk [vmem:[#allocation2 + $0x18] sm:$0xff] %vm199_vm6, %v244_v26 }
 0x15d   : > { %200 = vst.msk [vmem:[#allocation2] sm:$0xff] %vm199_vm6, %v198_v27 }
 0x161   : > { %v251_v33 = vld [vmem:[#allocation2 + $0x8] sm:$0xff] }
 0x162   : > { %v252_v28 = vld [vmem:[#allocation2 + $0x10] sm:$0xff]  ;;  %v264_v35 = vsel %vm199_vm6, %v251_v33, 0.0 }
 0x163   : > { %v275_v30 = vsel %vm199_vm6, %v252_v28, 0.0  ;;  %v253_v32 = vld [vmem:[#allocation2 + $0x18] sm:$0xff] }
 0x164   : > { %v250_v29 = vld [vmem:[#allocation2] sm:$0xff]  ;;  %276 = vadd.xlane.f32.xlu1 %v275_v30  ;;  %v286_v34 = vsel %vm199_vm6, %v253_v32, 0.0 }
 0x165   : > { %v254_v31 = vsel %vm199_vm6, %v250_v29, 0.0 }
 0x166   : > { %255 = vadd.xlane.f32.xlu0 %v254_v31 }
 0x16c   : > { %287 = vadd.xlane.f32.xlu1 %v286_v34 }
 0x16e   : > { %265 = vadd.xlane.f32.xlu0 %v264_v35 }
 0x1d7   : > { %v277_v36 = vpop.xlane.xlu1 %276 }
 0x1d8   : > { %v278_v38 = vrot.slane %v277_v36, 4 }
 0x1d9   : > { %v256_v37 = vpop.xlane.xlu0 %255 }
 0x1da   : > { %v257_v39 = vrot.slane %v256_v37, 4  ;;  %v279_v41 = vadd.f32 %v278_v38, %v277_v36 }
 0x1dc   : > { %v258_v40 = vadd.f32 %v257_v39, %v256_v37  ;;  %v280_v44 = vrot.slane %v279_v41, 2 }
 0x1de   : > { %v259_v42 = vrot.slane %v258_v40, 2  ;;  %v281_v53 = vadd.f32 %v280_v44, %v279_v41 }
 0x1df   : > { %v288_v45 = vpop.xlane.xlu1 %287 }
 0x1e0   : > { %v260_v43 = vadd.f32 %v259_v42, %v258_v40  ;;  %v289_v47 = vrot.slane %v288_v45, 4  ;;  %v282_v58 = vrot.slane %v281_v53, 1 }
 0x1e1   : > { %v266_v46 = vpop.xlane.xlu0 %265 }
 0x1e2   : > { %v267_v48 = vrot.slane %v266_v46, 4  ;;  %v261_v49 = vrot.slane %v260_v43, 1  ;;  %v290_v50 = vadd.f32 %v289_v47, %v288_v45  ;;  %v283_v63 = vadd.f32 %v282_v58, %v281_v53 }
 0x1e4   : > { %v268_v51 = vadd.f32 %v267_v48, %v266_v46  ;;  %v262_v52 = vadd.f32 %v261_v49, %v260_v43  ;;  %v291_v54 = vrot.slane %v290_v50, 2 }
 0x1e6   : > { %v269_v55 = vrot.slane %v268_v51, 2  ;;  %378 = vpush %v262_v52  ;;  %v292_v56 = vadd.f32 %v291_v54, %v290_v50 }
 0x1e8   : > { %v270_v57 = vadd.f32 %v269_v55, %v268_v51  ;;  %v293_v60 = vrot.slane %v292_v56, 1 }
 0x1ea   : > { %v271_v59 = vrot.slane %v270_v57, 1  ;;  %v294_v62 = vadd.f32 %v293_v60, %v292_v56 }
 0x1ec   : > { %v272_v61 = vadd.f32 %v271_v59, %v270_v57 }
 0x1ee   : > { %380 = vpush %v272_v61 }
 0x1ef   : > { %382 = vpush %v283_v63 }
 0x1f0   : > { %384 = vpush %v294_v62 }
 0x217   : > { %s379_s21 = spop %378 }
 0x21f   : > { %s381_s22 = spop %380 }
 0x220   : > { %s274_s23 = sadd.f32 %s381_s22, %s379_s21  ;;  %s383_s24 = spop %382 }
 0x221   : > { %s385_s26 = spop %384 }
 0x222   : > { %s285_s25 = ssub.f32 %s274_s23, %s383_s24 }
 0x224   : > { %s296_s27 = ssub.f32 %s285_s25, %s385_s26 }
 0x226   : > { %s297_s28 = smul.f32 0.125, %s296_s27 }
 0x228   : > { %s298_s29 = sadd.f32 0.2857143, %s297_s28 }
 0x22a   : > { %300 = sst [smem:[#allocation6]] %s298_s29 }
 0x22b PF: > { %p397_p8 = scmp.eq.s32.totalorder %s566_s10, 1  ;;  %s307_s3 = sshll.u32 %s649_s1, 4  ;;  %s308_s3 = int_to_ptr.hbm [resolvable:$true] %s307_s3 }
 0x22c   : > { %s536_s4 = smov [#allocation6]  }
 0x22d   : > { %389 = dma.smem_to_hbm (%p397_p8), %s536_s4, 16, %s308_s3, [#allocation5]  }
 0x22e   : > { %513 = dma.done.wait (%p397_p8), [#allocation5], 16  }
 0x22f   : > { %515 = vsyncadd (%p397_p8), [#allocation5], 4294967280 }
 0x230   : > { %316 = sfence }
 0x231 PF: > { %p12_p9 = scmp.ge.s32.totalorder %s569_s11, 4   ;;  %s653_s6 = smov %s522_s7 }
 0x232   : > { %s654_s7 = smov %s526_s8  ;;  %s655_s8 = smov %s579_s14 }
 0x233   : > { %s656_s9 = smov %s569_s11  ;;  %14 = sbr.rel (!%p12_p9) target bundleno = 4 (0x4), region = 73 }
 0x238   :  { %322 = vsyncpa [#allocation4], 1 }
 0x239   :  { %324 = vsyncpa [#allocation4 + $0x1], 1 }
 0x23a   :  { %325 = vsyncpa [#allocation5], 1 }
 0x23b   :  { %327 = vsyncpa [#allocation5 + $0x1], 1 }

</bundles_post_ra>
